<compile_context>
chip_gen: v7x
topology: tpu7x:2x2x1
jax: 0.10.0
libtpu: 0.0.40
codegen_flags: <defaults>
</compile_context>

<pallas_src>
import jax
import jax.numpy as jnp
from jax.experimental import pallas as pl
from jax.experimental.pallas import tpu as pltpu


def _fused_heads_kernel(b_ref, w_ref, xx1_ref, xx2_ref, x2_ref, o_ref):
    """One grid step over TB batch rows.

    b_ref   : (1, 1)   SMEM   pre-summed bias scalar (f32)
    w_ref   : (3, F)   VMEM   stacked weight rows [w1; w2; w3]
    xx*_ref : (TB, F)  VMEM   row-major activation tiles (batch on sublanes)
    o_ref   : (TB, 1)  VMEM   per-row fused output
    """
    w = w_ref[...].astype(jnp.float32)                       # (3, F)
    prod = (xx1_ref[...].astype(jnp.float32) * w[0:1, :]      # VPU broadcast-mul
            + xx2_ref[...].astype(jnp.float32) * w[1:2, :]
            + x2_ref[...].astype(jnp.float32) * w[2:3, :])    # (TB, F)
    acc = jnp.sum(prod, axis=1, keepdims=True)                # (TB, 1) XLU lane reduce
    o_ref[...] = (acc + b_ref[0, 0]).astype(o_ref.dtype)


def nested_input_net2(x1, x2, w1, b1, w2, b2, w3, b3, *,
                      tb=None, target_tiles=8, max_tb=2048):
    """Pallas forward of NestedInputNet2.

    x1 : tuple (xx1, xx2), each (B, 10)
    x2 : (B, 10)
    w* : (10, 1)  (transpose of PyTorch Linear.weight)
    b* : (1,)     (PyTorch Linear.bias)
    returns (B, 1) = dense1(xx1) + dense2(xx2) + dense3(x2)
    """
    xx1, xx2 = x1
    B, F = xx1.shape
    out_dtype = xx1.dtype
    itemsize = jnp.dtype(xx1.dtype).itemsize

    # --- tiny parameter prep only (a few hundred bytes, no big intermediates) ---
    w_stack = jnp.concatenate([w1.T, w2.T, w3.T], axis=0)            # (3, F)
    bias = (b1.astype(jnp.float32) + b2.astype(jnp.float32)
            + b3.astype(jnp.float32)).reshape(1, 1)                  # (1, 1) f32

    # --- batch tile: multiple of the sublane packing; aim for >= target_tiles
    #     grid steps (v7x megacore sharding) but cap per-step VMEM.            ---
    sub = 8 * max(1, 4 // max(1, itemsize))        # 8 f32, 16 bf16, 32 int8/fp8
    if tb is None:
        tb = pl.cdiv(B, target_tiles)
        tb = pl.cdiv(tb, sub) * sub
        tb = max(sub, min(tb, max_tb))
    num_tiles = pl.cdiv(B, tb)                     # ragged last block handled by Pallas

    cost = pl.CostEstimate(
        flops=2 * 3 * F * B,
        transcendentals=0,
        bytes_accessed=3 * B * F * itemsize
        + B * jnp.dtype(out_dtype).itemsize
        + 3 * F * jnp.dtype(w_stack.dtype).itemsize + 4,
    )

    out = pl.pallas_call(
        _fused_heads_kernel,
        out_shape=jax.ShapeDtypeStruct((B, 1), out_dtype),
        grid=(num_tiles,),
        in_specs=[
            pl.BlockSpec(memory_space=pltpu.MemorySpace.SMEM),        # pre-summed bias
            pl.BlockSpec((3, F), lambda i: (0, 0)),                   # weights (tiny, reused)
            pl.BlockSpec((tb, F), lambda i: (i, 0)),                  # xx1 rows: contiguous DMA
            pl.BlockSpec((tb, F), lambda i: (i, 0)),                  # xx2 rows
            pl.BlockSpec((tb, F), lambda i: (i, 0)),                  # x2  rows
        ],
        out_specs=pl.BlockSpec((tb, 1), lambda i: (i, 0)),
        compiler_params=pltpu.CompilerParams(
            dimension_semantics=("parallel",)),                       # shard batch across TCs
        cost_estimate=cost,
    )(bias, w_stack, xx1, xx2, x2)

    return out                                                        # already (B, 1)


def init_params(key, in_features=10, out_features=1, dtype=jnp.float32):
    """PyTorch nn.Linear default init: U(-k, k) with k = 1/sqrt(in_features)."""
    k = 1.0 / float(in_features) ** 0.5
    keys = jax.random.split(key, 6)
    w1 = jax.random.uniform(keys[0], (in_features, out_features), dtype, -k, k)
    b1 = jax.random.uniform(keys[1], (out_features,), dtype, -k, k)
    w2 = jax.random.uniform(keys[2], (in_features, out_features), dtype, -k, k)
    b2 = jax.random.uniform(keys[3], (out_features,), dtype, -k, k)
    w3 = jax.random.uniform(keys[4], (in_features, out_features), dtype, -k, k)
    b3 = jax.random.uniform(keys[5], (out_features,), dtype, -k, k)
    return w1, b1, w2, b2, w3, b3


if __name__ == "__main__":
    key = jax.random.PRNGKey(0)
    kxx1, kxx2, kx2, kp = jax.random.split(key, 4)

    B, F_IN = 8, 10  # nn.Linear(10, 1)
    xx1 = jax.random.normal(kxx1, (B, F_IN), jnp.float32)
    xx2 = jax.random.normal(kxx2, (B, F_IN), jnp.float32)
    x2 = jax.random.normal(kx2, (B, F_IN), jnp.float32)
    w1, b1, w2, b2, w3, b3 = init_params(kp, in_features=F_IN, out_features=1)

    out = nested_input_net2((xx1, xx2), x2, w1, b1, w2, b2, w3, b3)
    out = jax.block_until_ready(out)

    # Reference check: same math as the PyTorch forward.
    ref = xx1 @ w1 + b1 + xx2 @ w2 + b2 + x2 @ w3 + b3
    assert out.shape == (B, 1), out.shape
    assert jnp.allclose(out, ref, atol=1e-5, rtol=1e-5), float(jnp.max(jnp.abs(out - ref)))

    print("KERNEL_OK")
</pallas_src>

<mosaic_0001>
module attributes {stable_mosaic.version = 11 : i64} {
  func.func @_fused_heads_kernel(%arg0: i32, %arg1: memref<1x1xf32, #tpu.memory_space<smem>>, %arg2: memref<3x10xf32, #tpu.memory_space<vmem>>, %arg3: memref<8x10xf32, #tpu.memory_space<vmem>>, %arg4: memref<8x10xf32, #tpu.memory_space<vmem>>, %arg5: memref<8x10xf32, #tpu.memory_space<vmem>>, %arg6: memref<8x1xf32, #tpu.memory_space<vmem>>) attributes {dimension_semantics = [#tpu.dimension_semantics<parallel>], iteration_bounds = array<i64: 1>, scalar_prefetch = 0 : i64, scratch_operands = 0 : i64, tpu.core_type = #tpu.core_type<tc>, window_params = [{transform_indices = @transform_0, window_bounds = array<i64: 1, 1>}, {pipeline_mode = #tpu.pipeline_mode<synchronous>, transform_indices = @transform_1, window_bounds = array<i64: 3, 10>}, {transform_indices = @transform_2, window_bounds = array<i64: 8, 10>}, {transform_indices = @transform_3, window_bounds = array<i64: 8, 10>}, {transform_indices = @transform_4, window_bounds = array<i64: 8, 10>}, {transform_indices = @transform_5, window_bounds = array<i64: 8, 1>}]} {
    %c0 = arith.constant 0 : index
    %c0_0 = arith.constant 0 : index
    %0 = vector.load %arg2[%c0, %c0_0] : memref<3x10xf32, #tpu.memory_space<vmem>>, vector<3x10xf32>
    %c0_1 = arith.constant 0 : index
    %c0_2 = arith.constant 0 : index
    %1 = vector.load %arg3[%c0_1, %c0_2] : memref<8x10xf32, #tpu.memory_space<vmem>>, vector<8x10xf32>
    %2 = vector.extract_strided_slice %0 {offsets = [0, 0], sizes = [1, 10], strides = [1, 1]} : vector<3x10xf32> to vector<1x10xf32>
    %3 = vector.broadcast %2 : vector<1x10xf32> to vector<8x10xf32>
    %4 = arith.mulf %1, %3 : vector<8x10xf32>
    %c0_3 = arith.constant 0 : index
    %c0_4 = arith.constant 0 : index
    %5 = vector.load %arg4[%c0_3, %c0_4] : memref<8x10xf32, #tpu.memory_space<vmem>>, vector<8x10xf32>
    %6 = vector.extract_strided_slice %0 {offsets = [1, 0], sizes = [1, 10], strides = [1, 1]} : vector<3x10xf32> to vector<1x10xf32>
    %7 = vector.broadcast %6 : vector<1x10xf32> to vector<8x10xf32>
    %8 = arith.mulf %5, %7 : vector<8x10xf32>
    %9 = arith.addf %4, %8 : vector<8x10xf32>
    %c0_5 = arith.constant 0 : index
    %c0_6 = arith.constant 0 : index
    %10 = vector.load %arg5[%c0_5, %c0_6] : memref<8x10xf32, #tpu.memory_space<vmem>>, vector<8x10xf32>
    %11 = vector.extract_strided_slice %0 {offsets = [2, 0], sizes = [1, 10], strides = [1, 1]} : vector<3x10xf32> to vector<1x10xf32>
    %12 = vector.broadcast %11 : vector<1x10xf32> to vector<8x10xf32>
    %13 = arith.mulf %10, %12 : vector<8x10xf32>
    %14 = arith.addf %9, %13 : vector<8x10xf32>
    %cst = arith.constant dense<0.000000e+00> : vector<8xf32>
    %15 = vector.multi_reduction <add>, %14, %cst [1] : vector<8x10xf32> to vector<8xf32>
    %16 = vector.shape_cast %15 : vector<8xf32> to vector<8x1xf32>
    %c0_7 = arith.constant 0 : index
    %c0_8 = arith.constant 0 : index
    %17 = memref.load %arg1[%c0_7, %c0_8] : memref<1x1xf32, #tpu.memory_space<smem>>
    %18 = vector.broadcast %17 : f32 to vector<8x1xf32>
    %19 = arith.addf %16, %18 : vector<8x1xf32>
    %c0_9 = arith.constant 0 : index
    %c0_10 = arith.constant 0 : index
    %20 = vector.load %arg6[%c0_9, %c0_10] : memref<8x1xf32, #tpu.memory_space<vmem>>, vector<8x1xf32>
    tpu.vector_store %arg6[%c0_9, %c0_10], %19 {strides = array<i32>} : memref<8x1xf32, #tpu.memory_space<vmem>>, vector<8x1xf32>,
    return
  }
  func.func @transform_0(%arg0: i32) -> (i32, i32) {
    %c0_i32 = arith.constant 0 : i32
    %c0_i32_0 = arith.constant 0 : i32
    %c0_i32_1 = arith.constant 0 : i32
    return %c0_i32, %c0_i32_0 : i32, i32
  }
  func.func @transform_1(%arg0: i32) -> (i32, i32) {
    %c0_i32 = arith.constant 0 : i32
    %c0_i32_0 = arith.constant 0 : i32
    %c0_i32_1 = arith.constant 0 : i32
    return %c0_i32, %c0_i32_0 : i32, i32
  }
  func.func @transform_2(%arg0: i32) -> (i32, i32) {
    %c0_i32 = arith.constant 0 : i32
    %c0_i32_0 = arith.constant 0 : i32
    return %arg0, %c0_i32 : i32, i32
  }
  func.func @transform_3(%arg0: i32) -> (i32, i32) {
    %c0_i32 = arith.constant 0 : i32
    %c0_i32_0 = arith.constant 0 : i32
    return %arg0, %c0_i32 : i32, i32
  }
  func.func @transform_4(%arg0: i32) -> (i32, i32) {
    %c0_i32 = arith.constant 0 : i32
    %c0_i32_0 = arith.constant 0 : i32
    return %arg0, %c0_i32 : i32, i32
  }
  func.func @transform_5(%arg0: i32) -> (i32, i32) {
    %c0_i32 = arith.constant 0 : i32
    %c0_i32_0 = arith.constant 0 : i32
    return %arg0, %c0_i32 : i32, i32
  }
}

</mosaic_0001>

<bundles_post_ra>
// kernel: tpu_custom_call.1
= control target key start
LH: loop header
LB: loop body
LE: loop exit
PB: predicated region body
PF: predicated region fallthrough
CT: control target
= control target key end

     0   :  { %11 = vsyncpa [#allocation4], 0  ;;  %s243_s0 = inlined_call_operand.<no memory space> [shape: f32[1,1], index: 0, kind: input, shape index: {}]   ;;  %s244_s1 = inlined_call_operand.hbm [shape: f32[3,10], index: 1, kind: input, shape index: {}]   ;;  %s245_s2 = inlined_call_operand.hbm [shape: f32[8,10], index: 2, kind: input, shape index: {}]   ;;  %s246_s3 = inlined_call_operand.vmem [shape: f32[8,10], index: 3, kind: input, shape index: {}]   ;;  %s247_s4 = inlined_call_operand.hbm [shape: f32[8,10], index: 4, kind: input, shape index: {}]   ;;  %s248_s5 = inlined_call_operand.vmem [shape: f32[8,1], index: 5, kind: output, shape index: {}]  }
   0x1   :  { %12 = vsyncpa [#allocation6], 0  ;;  %s165_s18 = smov [#allocation5]   ;;  %s166_s20 = smov [#allocation3]  }
   0x2   :  { %s31_s19 = sshll.u32 %s165_s18, 4  ;;  %s21_s21 = sshll.u32 %s166_s20, 4  ;;  %s32_s19 = int_to_ptr.vmem [resolvable:$true] %s31_s19  ;;  %s22_s21 = int_to_ptr.vmem [resolvable:$true] %s21_s21 }
   0x3   :  { %s95_s24 = scalar_lea.hbm %s245_s2, 128 }
   0x4   :  { %p96_p0 = scmp.ne.s32.totalorder %s245_s2, %s95_s24  ;;  %p99_p1 = scmp.lt.u32.totalorder %s95_s24, %s245_s2 }
   0x6   :  { %p101_p2 = pnand %p99_p1, %p96_p0 }
   0x8   :  { %104 = shalt.err (!%p101_p2)
}
   0x9   :  { %s105_s29 = scalar_lea.vmem %s32_s19, 128  ;;  %p110_p4 = scmp.lt.s32.totalorder %s32_s19, %s32_s19 }
   0xa   :  { %p106_p3 = scmp.ne.s32.totalorder %s32_s19, %s105_s29  ;;  %p111_p5 = scmp.lt.s32.totalorder %s105_s29, %s105_s29 }
   0xc   :  { %p112_p6 = por %p111_p5, %p110_p4 }
   0xe   :  { %p113_p7 = pnand %p112_p6, %p106_p3 }
  0x10   :  { %116 = shalt.err (!%p113_p7)
}
  0x11   :  { %34 = dma.hbm_to_vmem [thread:$0]  %s245_s2, 128, %s32_s19, [#allocation6]  }
  0x12   :  { %s117_s9 = scalar_lea.hbm %s244_s1, 64 }
  0x13   :  { %p118_p8 = scmp.ne.s32.totalorder %s244_s1, %s117_s9  ;;  %p121_p9 = scmp.lt.u32.totalorder %s117_s9, %s244_s1 }
  0x15   :  { %p123_p10 = pnand %p121_p9, %p118_p8 }
  0x17   :  { %126 = shalt.err (!%p123_p10)
}
  0x18   :  { %s127_s14 = scalar_lea.vmem %s22_s21, 64  ;;  %p132_p12 = scmp.lt.s32.totalorder %s22_s21, %s22_s21 }
  0x19   :  { %p128_p11 = scmp.ne.s32.totalorder %s22_s21, %s127_s14  ;;  %p133_p13 = scmp.lt.s32.totalorder %s127_s14, %s127_s14 }
  0x1b   :  { %p134_p0 = por %p133_p13, %p132_p12 }
  0x1d   :  { %p135_p1 = pnand %p134_p0, %p128_p11 }
  0x1f   :  { %138 = shalt.err (!%p135_p1)
}
  0x20   :  { %24 = dma.hbm_to_vmem [thread:$0]  %s244_s1, 64, %s22_s21, [#allocation4]  }
  0x21   :  { %s167_s16 = smov [#allocation7]   ;;  %s139_s20 = scalar_lea.hbm %s247_s4, 128 }
  0x22   :  { %s43_s17 = sshll.u32 %s167_s16, 4  ;;  %p140_p2 = scmp.ne.s32.totalorder %s247_s4, %s139_s20  ;;  %s44_s17 = int_to_ptr.vmem [resolvable:$true] %s43_s17 }
  0x23   :  { %p143_p3 = scmp.lt.u32.totalorder %s139_s20, %s247_s4 }
  0x25   :  { %p145_p4 = pnand %p143_p3, %p140_p2 }
  0x27   :  { %148 = shalt.err (!%p145_p4)
}
  0x28   :  { %s149_s26 = scalar_lea.vmem %s44_s17, 128  ;;  %p154_p6 = scmp.lt.s32.totalorder %s44_s17, %s44_s17 }
  0x29   :  { %p150_p5 = scmp.ne.s32.totalorder %s44_s17, %s149_s26  ;;  %p155_p7 = scmp.lt.s32.totalorder %s149_s26, %s149_s26 }
  0x2b   :  { %p156_p8 = por %p155_p7, %p154_p6 }
  0x2d   :  { %p157_p9 = pnand %p156_p8, %p150_p5 }
  0x2f   :  { %160 = shalt.err (!%p157_p9)
}
  0x30   :  { %46 = dma.hbm_to_vmem [thread:$0]  %s247_s4, 128, %s44_s17, [#allocation6]  }
  0x31   :  { %161 = dma.done.wait [#allocation4], 64  }
  0x32   :  { %162 = vsyncadd [#allocation4], 4294967232 }
  0x33   :  { %163 = dma.done.wait [#allocation6], 256  }
  0x34   :  { %164 = vsyncadd [#allocation6], 4294967040  ;;  %v58_v0 = vlaneseq  ;;  %v56_v5 = vld [vmem:[#allocation3] sm:$0x7]  ;;  %v57_v6 = vld [vmem:[#allocation5] sm:$0xff]  ;;  %vm77_vm0 = vcmask 80896   ;;  %v82_v18 = vstv %s243_s0 }
  0x35   :  { %v63_v7 = vld [vmem:[%s246_s3] sm:$0xff]  ;;  %v70_v10 = vld [vmem:[#allocation7] sm:$0xff]  ;;  %vm84_vm1 = vcmask 7168  }
  0x36   :  { %v59_v1 = vshrl.u32 %v58_v0, 7 }
  0x38   :  { %v60_v2 = vsub.s32 0, %v59_v1  ;;  %v66_v3 = vsub.s32 1, %v59_v1  ;;  %v73_v4 = vsub.s32 2, %v59_v1 }
  0x3a   :  { %v61_v8 = vrot.slane %v56_v5, %v60_v2  ;;  %v67_v9 = vrot.slane %v56_v5, %v66_v3  ;;  %v74_v11 = vrot.slane %v56_v5, %v73_v4 }
  0x3c   :  { %v62_v12 = vmul.f32 %v61_v8, %v57_v6  ;;  %v68_v13 = vmul.f32 %v67_v9, %v63_v7  ;;  %v75_v14 = vmul.f32 %v74_v11, %v70_v10 }
  0x3e   :  { %v69_v15 = vadd.f32 %v68_v13, %v62_v12 }
  0x40   :  { %v76_v16 = vadd.f32 %v75_v14, %v69_v15 }
  0x42   :  { %v78_v17 = vsel %vm77_vm0, %v76_v16, 0.0 }
  0x43   :  { %79 = vadd.xlane.f32.xlu0 %v78_v17 }
  0xd0   :  { %v80_v19 = vpop.xlane.xlu0 %79 }
  0xd1   :  { %v83_v20 = vadd.f32 %v82_v18, %v80_v19 }
  0xd3   :  { %85 = vst.msk [vmem:[%s248_s5] sm:$0xff] %vm84_vm1, %v83_v20 }
  0xd4   :  { %90 = vsyncpa [#allocation4], 1 }
  0xd5   :  { %91 = vsyncpa [#allocation6], 1 }

</bundles_post_ra>
